<compile_context>
chip_gen: v7x
topology: tpu7x:2x2x1
jax: 0.10.0
libtpu: 0.0.40
codegen_flags: <defaults>
</compile_context>

<pallas_src>
import jax
import jax.numpy as jnp
from jax.experimental import pallas as pl
from jax.experimental.pallas import tpu as pltpu

POS_WEIGHT = 1.0                    # module hardcodes pos_weight = 1
NEG_CLAMP = -100.0                  # torch.nn.BCELoss-style log clamp
LANES = 128                         # TPU lane width (last dim)
SUBLANES = 8                        # f32 sublane count
MAX_TILE_ROWS = 8192                # 8192 x 128 f32 = 4 MiB per input tile
VMEM_LIMIT_BYTES = 40 * 1024 * 1024 # > working set, < v7x 64 MiB physical


def _round_up(x, m):
    return (x + m - 1) // m * m


def _num_tensorcores():
    """Best-effort TensorCore count (v7x: 2, v5e/v6e: 1). Defaults to 1."""
    try:
        info = pltpu.get_tpu_info()
    except Exception:
        return 1
    for attr in ("num_cores", "core_count", "num_tensorcores", "tensorcore_count"):
        v = getattr(info, attr, None)
        if isinstance(v, int) and 1 <= v <= 16:
            return v
    return 1


def _make_bce_kernel(red_steps, tile_rows, num_blocks, rows, ragged, excess):
    """Build the kernel with all tiling facts baked in as Python constants."""
    num_full = num_blocks - 1 if ragged else num_blocks
    rem_rows = rows - (num_blocks - 1) * tile_rows      # valid rows in last block
    groups = tile_rows // SUBLANES
    need_guard = ragged or (excess > 0)

    def block_sum(x):
        # (tile_rows, 128) -> (g, 8, 128) is layout-free; sum over the leading
        # (non-layout) axis is pure vreg adds -> accumulator stays a full vreg.
        return jnp.sum(x.reshape(groups, SUBLANES, LANES), axis=0)

    def bce_kernel(p_ref, t_ref, out_ref, acc_ref):
        j = pl.program_id(1)
        b = pl.program_id(0) * red_steps + j            # global block index

        @pl.when(j == 0)
        def _():
            acc_ref[...] = jnp.zeros_like(acc_ref)

        p = p_ref[...].astype(jnp.float32)
        t = t_ref[...].astype(jnp.float32)

        # loss = -pos_weight * t * log(p) - (1 - t) * log(1 - p)
        # log1p(-p) is the accurate log(1-p); the -100 clamp mirrors
        # torch.nn.BCELoss stabilization and makes the (p=1, t=1) padding
        # contribute exactly 0.
        log_p = jnp.maximum(jnp.log(p), NEG_CLAMP)
        log_1mp = jnp.maximum(jnp.log1p(-p), NEG_CLAMP)
        loss = -(POS_WEIGHT * t * log_p + (1.0 - t) * log_1mp)

        if not need_guard:
            # Common case: every block is fully in-bounds -> no mask, no branch.
            acc_ref[...] += block_sum(loss)
        else:
            @pl.when(b < num_full)
            def _():
                acc_ref[...] += block_sum(loss)

            if ragged:
                # Only the single ragged last block pays for the iota + mask.
                @pl.when(b == num_blocks - 1)
                def _():
                    row_ids = jax.lax.broadcasted_iota(jnp.int32, loss.shape, 0)
                    acc_ref[...] += block_sum(
                        jnp.where(row_ids < rem_rows, loss, 0.0))
            # Blocks with b >= num_blocks (grid excess) contribute nothing.

        @pl.when(j == red_steps - 1)
        def _():
            out_ref[0] = acc_ref[...]

    return bce_kernel


def bce_loss(logits, target, *, max_tile_rows=MAX_TILE_ROWS):
    """Mean BCE over all elements; `logits` are probabilities in (0, 1)."""
    assert logits.shape == target.shape
    total_n = logits.size
    assert total_n > 0

    p_flat = logits.reshape(-1)
    t_flat = target.reshape(-1)

    # Pad only up to a whole (8,128) tile (< 1024 elements). Fill (p=1, t=1)
    # has exactly zero clamped loss, so no in-kernel masking is needed for it.
    # Shapes already divisible by 1024 take a zero-copy path (reshape only).
    padded_n = _round_up(total_n, SUBLANES * LANES)
    pad = padded_n - total_n
    if pad:
        p_flat = jnp.concatenate([p_flat, jnp.ones((pad,), p_flat.dtype)])
        t_flat = jnp.concatenate([t_flat, jnp.ones((pad,), t_flat.dtype)])
    rows = padded_n // LANES                           # multiple of SUBLANES

    # Tiling: `par` stripes (one per TensorCore) x `red_steps` reduction steps.
    par = max(1, _num_tensorcores())
    tile_rows = min(_round_up(max_tile_rows, SUBLANES),
                    _round_up(pl.cdiv(rows, par), SUBLANES))
    num_blocks = pl.cdiv(rows, tile_rows)
    par = min(par, num_blocks)
    red_steps = pl.cdiv(num_blocks, par)
    excess = par * red_steps - num_blocks              # grid slots past the data
    ragged = (rows % tile_rows) != 0                   # last block partially valid

    p2d = p_flat.reshape(rows, LANES)
    t2d = t_flat.reshape(rows, LANES)

    last_block = num_blocks - 1
    if excess:
        # Clamp so excess grid slots re-DMA the last block (skipped in-kernel).
        def in_index(i, j):
            return (jnp.minimum(i * red_steps + j, last_block), 0)
    else:
        def in_index(i, j):
            return (i * red_steps + j, 0)

    kernel = _make_bce_kernel(red_steps, tile_rows, num_blocks, rows, ragged,
                              excess)

    partial = pl.pallas_call(
        kernel,
        out_shape=jax.ShapeDtypeStruct((par, SUBLANES, LANES), jnp.float32),
        grid_spec=pltpu.PrefetchScalarGridSpec(
            num_scalar_prefetch=0,
            grid=(par, red_steps),
            in_specs=[
                pl.BlockSpec((tile_rows, LANES), in_index),
                pl.BlockSpec((tile_rows, LANES), in_index),
            ],
            out_specs=pl.BlockSpec((1, SUBLANES, LANES), lambda i, j: (i, 0, 0)),
            scratch_shapes=[pltpu.VMEM((SUBLANES, LANES), jnp.float32)],
        ),
        compiler_params=pltpu.CompilerParams(
            dimension_semantics=("parallel", "arbitrary"),
            vmem_limit_bytes=VMEM_LIMIT_BYTES,
        ),
    )(p2d, t2d)

    # Tiny final cross-sublane / cross-lane / cross-stripe reduce + mean scale.
    return jnp.sum(partial) / total_n


def _reference(logits, target):
    return jnp.mean(
        -POS_WEIGHT * target * jnp.log(logits)
        - (1.0 - target) * jnp.log(1.0 - logits))


if __name__ == "__main__":
    key = jax.random.PRNGKey(0)
    k1, k2, k3, k4, k5, k6 = jax.random.split(key, 6)

    # main test: NCHW shape like the module would see (zero-copy path)
    B, C, H, W = 2, 4, 16, 16
    logits = jax.nn.sigmoid(jax.random.normal(k1, (B, C, H, W), jnp.float32))
    target = (jax.random.uniform(k2, (B, C, H, W)) > 0.5).astype(jnp.float32)

    loss = jax.block_until_ready(bce_loss(logits, target))
    ref = _reference(logits, target)
    assert jnp.allclose(loss, ref, rtol=1e-5, atol=1e-6), (loss, ref)

    # odd-sized test: exercises the small zero-loss padding path
    shp = (3, 5, 7, 11)  # 1155 elements, not a multiple of 8*128
    logits2 = jax.nn.sigmoid(jax.random.normal(k3, shp, jnp.float32))
    target2 = (jax.random.uniform(k4, shp) > 0.5).astype(jnp.float32)

    loss2 = jax.block_until_ready(bce_loss(logits2, target2))
    ref2 = _reference(logits2, target2)
    assert jnp.allclose(loss2, ref2, rtol=1e-5, atol=1e-6), (loss2, ref2)

    # ragged-tile test: small max_tile_rows forces a multi-block reduction with
    # a partially-valid (masked) last block
    shp3 = (2, 5, 16, 16)  # 2560 elements -> 24 rows, ragged vs 16-row tiles
    logits3 = jax.nn.sigmoid(jax.random.normal(k5, shp3, jnp.float32))
    target3 = (jax.random.uniform(k6, shp3) > 0.5).astype(jnp.float32)

    loss3 = jax.block_until_ready(bce_loss(logits3, target3, max_tile_rows=16))
    ref3 = _reference(logits3, target3)
    assert jnp.allclose(loss3, ref3, rtol=1e-5, atol=1e-6), (loss3, ref3)

    print("KERNEL_OK")
</pallas_src>

<mosaic_0001>
module attributes {stable_mosaic.version = 11 : i64} {
  func.func @bce_kernel(%arg0: i32, %arg1: i32, %arg2: memref<16x128xf32, #tpu.memory_space<vmem>>, %arg3: memref<16x128xf32, #tpu.memory_space<vmem>>, %arg4: memref<1x8x128xf32, #tpu.memory_space<vmem>>, %arg5: memref<8x128xf32, #tpu.memory_space<vmem>>) attributes {dimension_semantics = [#tpu.dimension_semantics<parallel>, #tpu.dimension_semantics<arbitrary>], iteration_bounds = array<i64: 1, 1>, scalar_prefetch = 0 : i64, scratch_operands = 1 : i64, tpu.core_type = #tpu.core_type<tc>, window_params = [{transform_indices = @transform_0, window_bounds = array<i64: 16, 128>}, {transform_indices = @transform_1, window_bounds = array<i64: 16, 128>}, {transform_indices = @transform_2, window_bounds = array<i64: 1, 8, 128>}]} {
    %c0_i32 = arith.constant 0 : i32
    %0 = arith.cmpi eq, %arg1, %c0_i32 : i32
    %1 = arith.extui %0 : i1 to i32
    %c0_i32_0 = arith.constant 0 : i32
    %2 = arith.cmpi ne, %1, %c0_i32_0 : i32
    scf.if %2 {
      %cst_16 = arith.constant 0.000000e+00 : f32
      %30 = vector.broadcast %cst_16 : f32 to vector<8x128xf32>
      %c0_17 = arith.constant 0 : index
      %c0_18 = arith.constant 0 : index
      %31 = vector.load %arg5[%c0_17, %c0_18] : memref<8x128xf32, #tpu.memory_space<vmem>>, vector<8x128xf32>
      tpu.vector_store %arg5[%c0_17, %c0_18], %30 {strides = array<i32>} : memref<8x128xf32, #tpu.memory_space<vmem>>, vector<8x128xf32>,
    } else {
    }
    %c0 = arith.constant 0 : index
    %c0_1 = arith.constant 0 : index
    %3 = vector.load %arg2[%c0, %c0_1] : memref<16x128xf32, #tpu.memory_space<vmem>>, vector<16x128xf32>
    %c0_2 = arith.constant 0 : index
    %c0_3 = arith.constant 0 : index
    %4 = vector.load %arg3[%c0_2, %c0_3] : memref<16x128xf32, #tpu.memory_space<vmem>>, vector<16x128xf32>
    %5 = math.log %3 : vector<16x128xf32>
    %cst = arith.constant -1.000000e+02 : f32
    %6 = vector.broadcast %cst : f32 to vector<16x128xf32>
    %7 = arith.maximumf %5, %6 : vector<16x128xf32>
    %cst_4 = arith.constant 0.000000e+00 : f32
    %8 = vector.broadcast %cst_4 : f32 to vector<16x128xf32>
    %9 = arith.subf %8, %3 : vector<16x128xf32>
    %10 = math.log1p %9 : vector<16x128xf32>
    %cst_5 = arith.constant -1.000000e+02 : f32
    %11 = vector.broadcast %cst_5 : f32 to vector<16x128xf32>
    %12 = arith.maximumf %10, %11 : vector<16x128xf32>
    %cst_6 = arith.constant 1.000000e+00 : f32
    %13 = vector.broadcast %cst_6 : f32 to vector<16x128xf32>
    %14 = arith.mulf %13, %4 : vector<16x128xf32>
    %15 = arith.mulf %14, %7 : vector<16x128xf32>
    %cst_7 = arith.constant 1.000000e+00 : f32
    %16 = vector.broadcast %cst_7 : f32 to vector<16x128xf32>
    %17 = arith.subf %16, %4 : vector<16x128xf32>
    %18 = arith.mulf %17, %12 : vector<16x128xf32>
    %19 = arith.addf %15, %18 : vector<16x128xf32>
    %cst_8 = arith.constant 0.000000e+00 : f32
    %20 = vector.broadcast %cst_8 : f32 to vector<16x128xf32>
    %21 = arith.subf %20, %19 : vector<16x128xf32>
    %c0_9 = arith.constant 0 : index
    %c0_10 = arith.constant 0 : index
    %22 = vector.load %arg5[%c0_9, %c0_10] : memref<8x128xf32, #tpu.memory_space<vmem>>, vector<8x128xf32>
    %23 = vector.shape_cast %21 : vector<16x128xf32> to vector<2x8x128xf32>
    %cst_11 = arith.constant dense<0.000000e+00> : vector<8x128xf32>
    %24 = vector.multi_reduction <add>, %23, %cst_11 [0] : vector<2x8x128xf32> to vector<8x128xf32>
    %25 = arith.addf %22, %24 : vector<8x128xf32>
    %c0_12 = arith.constant 0 : index
    %c0_13 = arith.constant 0 : index
    %26 = vector.load %arg5[%c0_12, %c0_13] : memref<8x128xf32, #tpu.memory_space<vmem>>, vector<8x128xf32>
    tpu.vector_store %arg5[%c0_12, %c0_13], %25 {strides = array<i32>} : memref<8x128xf32, #tpu.memory_space<vmem>>, vector<8x128xf32>,
    %c0_i32_14 = arith.constant 0 : i32
    %27 = arith.cmpi eq, %arg1, %c0_i32_14 : i32
    %28 = arith.extui %27 : i1 to i32
    %c0_i32_15 = arith.constant 0 : i32
    %29 = arith.cmpi ne, %28, %c0_i32_15 : i32
    scf.if %29 {
      %c0_16 = arith.constant 0 : index
      %c0_17 = arith.constant 0 : index
      %30 = vector.load %arg5[%c0_16, %c0_17] : memref<8x128xf32, #tpu.memory_space<vmem>>, vector<8x128xf32>
      %c0_18 = arith.constant 0 : index
      %c0_19 = arith.constant 0 : index
      %c0_20 = arith.constant 0 : index
      %31 = vector.load %arg4[%c0_18, %c0_19, %c0_20] : memref<1x8x128xf32, #tpu.memory_space<vmem>>, vector<1x8x128xf32>
      %32 = vector.shape_cast %31 : vector<1x8x128xf32> to vector<8x128xf32>
      %33 = vector.shape_cast %30 : vector<8x128xf32> to vector<1x8x128xf32>
      tpu.vector_store %arg4[%c0_18, %c0_19, %c0_20], %33 {strides = array<i32>} : memref<1x8x128xf32, #tpu.memory_space<vmem>>, vector<1x8x128xf32>,
    } else {
    }
    return
  }
  func.func @transform_0(%arg0: i32, %arg1: i32) -> (i32, i32) {
    %c1_i32 = arith.constant 1 : i32
    %0 = arith.muli %arg0, %c1_i32 : i32
    %1 = arith.addi %0, %arg1 : i32
    %c0_i32 = arith.constant 0 : i32
    %c0_i32_0 = arith.constant 0 : i32
    return %1, %c0_i32 : i32, i32
  }
  func.func @transform_1(%arg0: i32, %arg1: i32) -> (i32, i32) {
    %c1_i32 = arith.constant 1 : i32
    %0 = arith.muli %arg0, %c1_i32 : i32
    %1 = arith.addi %0, %arg1 : i32
    %c0_i32 = arith.constant 0 : i32
    %c0_i32_0 = arith.constant 0 : i32
    return %1, %c0_i32 : i32, i32
  }
  func.func @transform_2(%arg0: i32, %arg1: i32) -> (i32, i32, i32) {
    %c0_i32 = arith.constant 0 : i32
    %c0_i32_0 = arith.constant 0 : i32
    %c0_i32_1 = arith.constant 0 : i32
    return %arg0, %c0_i32, %c0_i32_0 : i32, i32, i32
  }
}

</mosaic_0001>

<bundles_post_ra>
// kernel: tpu_custom_call.1
= control target key start
LH: loop header
LB: loop body
LE: loop exit
PB: predicated region body
PF: predicated region fallthrough
CT: control target
= control target key end

     0   :  { %7 = vsyncpa [#allocation4], 0  ;;  %s265_s0 = inlined_call_operand.hbm [shape: f32[16,128], index: 0, kind: input, shape index: {}]   ;;  %s266_s1 = inlined_call_operand.hbm [shape: f32[16,128], index: 1, kind: input, shape index: {}]   ;;  %s267_s2 = inlined_call_operand.hbm [shape: f32[1,8,128], index: 2, kind: output, shape index: {}]  }
   0x1   :  { %8 = vsyncpa [#allocation7], 0 }
   0x2   :  { %9 = vsyncpa [#allocation5], 0  ;;  %s209_s9 = smov [#allocation3]   ;;  %s137_s13 = scalar_lea.hbm %s265_s0, 256 }
   0x3   :  { %s19_s10 = sshll.u32 %s209_s9, 4  ;;  %p138_p0 = scmp.ne.s32.totalorder %s265_s0, %s137_s13  ;;  %s20_s10 = int_to_ptr.vmem [resolvable:$true] %s19_s10 }
   0x4   :  { %p141_p1 = scmp.lt.u32.totalorder %s137_s13, %s265_s0 }
   0x6   :  { %p143_p2 = pnand %p141_p1, %p138_p0 }
   0x8   :  { %146 = shalt.err (!%p143_p2)
}
   0x9   :  { %s147_s18 = scalar_lea.vmem %s20_s10, 256  ;;  %p152_p4 = scmp.lt.s32.totalorder %s20_s10, %s20_s10 }
   0xa   :  { %p148_p3 = scmp.ne.s32.totalorder %s20_s10, %s147_s18  ;;  %p153_p5 = scmp.lt.s32.totalorder %s147_s18, %s147_s18 }
   0xc   :  { %p154_p6 = por %p153_p5, %p152_p4 }
   0xe   :  { %p155_p7 = pnand %p154_p6, %p148_p3 }
  0x10   :  { %158 = shalt.err (!%p155_p7)
}
  0x11   :  { %s210_s19 = smov 128   ;;  %s211_s20 = smov 8  }
  0x12   :  { %25 = dma.hbm_to_vmem [thread:$0]  %s265_s0, 256, %s20_s10, [#allocation4], %s210_s19, %s210_s19, %s211_s20  }
  0x13   :  { %s212_s23 = smov [#allocation6]   ;;  %s159_s27 = scalar_lea.hbm %s266_s1, 256 }
  0x14   :  { %s35_s24 = sshll.u32 %s212_s23, 4  ;;  %p160_p8 = scmp.ne.s32.totalorder %s266_s1, %s159_s27  ;;  %s36_s24 = int_to_ptr.vmem [resolvable:$true] %s35_s24 }
  0x15   :  { %p163_p9 = scmp.lt.u32.totalorder %s159_s27, %s266_s1 }
  0x17   :  { %p165_p10 = pnand %p163_p9, %p160_p8 }
  0x19   :  { %168 = shalt.err (!%p165_p10)
}
  0x1a   :  { %s169_s4 = scalar_lea.vmem %s36_s24, 256  ;;  %p174_p12 = scmp.lt.s32.totalorder %s36_s24, %s36_s24 }
  0x1b   :  { %p170_p11 = scmp.ne.s32.totalorder %s36_s24, %s169_s4  ;;  %p175_p13 = scmp.lt.s32.totalorder %s169_s4, %s169_s4 }
  0x1d   :  { %p176_p0 = por %p175_p13, %p174_p12 }
  0x1f   :  { %p177_p1 = pnand %p176_p0, %p170_p11 }
  0x21   :  { %180 = shalt.err (!%p177_p1)
}
  0x22   :  { %41 = dma.hbm_to_vmem [thread:$0]  %s266_s1, 256, %s36_s24, [#allocation7], %s210_s19, %s210_s19, %s211_s20  }
  0x23   :  { %203 = dma.done.wait [#allocation4], 256  }
  0x24   :  { %204 = vsyncadd [#allocation4], 4294967040 }
  0x25   :  { %205 = dma.done.wait [#allocation7], 256  }
  0x26   :  { %206 = vsyncadd [#allocation7], 4294967040  ;;  %v57_v0 = vld [vmem:[#allocation3] sm:$0xff]  ;;  %v58_v1 = vld [vmem:[#allocation3 + $0x8] sm:$0xff]  ;;  %s213_s1 = smov [#allocation8]  }
  0x27   :  { %129 = vlog2.f32 %v57_v0  ;;  %v67_v2 = vsub.f32 0.0, %v57_v0  ;;  %v68_v3 = vsub.f32 0.0, %v58_v1  ;;  %v59_v16 = vld [vmem:[#allocation6] sm:$0xff]  ;;  %v60_v19 = vld [vmem:[#allocation6 + $0x8] sm:$0xff]  ;;  %s114_s6 = sshll.u32 %s213_s1, 4  ;;  %s115_s6 = int_to_ptr.vmem [resolvable:$true] %s114_s6 }
  0x28   :  { %131 = vlog2.f32 %v58_v1  ;;  %v91_v26 = vsub.f32 1.0, %v59_v16  ;;  %v92_v28 = vsub.f32 1.0, %v60_v19  ;;  %s181_s7 = scalar_lea.vmem %s115_s6, 128  ;;  %p186_p3 = scmp.lt.s32.totalorder %s115_s6, %s115_s6 }
  0x29   :  { %v69_v4 = vadd.f32 1.0, %v67_v2  ;;  %v78_v5 = vadd.f32 1.0, %v68_v3  ;;  %v72_v6 = vmul.f32 -0.5, %v67_v2  ;;  %v81_v7 = vmul.f32 -0.5, %v68_v3  ;;  %p182_p2 = scmp.ne.s32.totalorder %s115_s6, %s181_s7  ;;  %p187_p4 = scmp.lt.s32.totalorder %s181_s7, %s181_s7 }
  0x2a   :  { %v75_v10 = vand.u32 2147483647, %v67_v2  ;;  %v84_v14 = vand.u32 2147483647, %v68_v3 }
  0x2b   :  { %133 = vlog2.f32 %v69_v4  ;;  %v73_v8 = vadd.f32 1.0, %v72_v6  ;;  %v82_v11 = vadd.f32 1.0, %v81_v7  ;;  %p188_p5 = por %p187_p4, %p186_p3 }
  0x2c   :  { %135 = vlog2.f32 %v78_v5  ;;  %vm76_vm0 = vcmp.lt.f32.partialorder %v75_v10, 0.0004427343  ;;  %vm85_vm1 = vcmp.lt.f32.partialorder %v84_v14, 0.0004427343 }
  0x2d   :  { %v74_v17 = vmul.f32 %v73_v8, %v67_v2  ;;  %v83_v21 = vmul.f32 %v82_v11, %v68_v3  ;;  %p189_p6 = pnand %p188_p5, %p182_p2 }
  0x31   :  { %v130_v9 = vpop.eup %129 }
  0x32   :  { %v132_v12 = vpop.eup %131  ;;  %v62_v13 = vmul.f32 0.6931472, %v130_v9 }
  0x33   :  { %v64_v15 = vmul.f32 0.6931472, %v132_v12 }
  0x34   :  { %v65_v20 = vmax.f32 %v62_v13, -100.0 }
  0x35   :  { %v134_v18 = vpop.eup %133  ;;  %v66_v23 = vmax.f32 %v64_v15, -100.0 }
  0x36   :  { %v136_v22 = vpop.eup %135  ;;  %v71_v24 = vmul.f32 0.6931472, %v134_v18  ;;  %v89_v31 = vmul.f32 %v65_v20, %v59_v16 }
  0x37   :  { %v80_v25 = vmul.f32 0.6931472, %v136_v22  ;;  %v90_v33 = vmul.f32 %v66_v23, %v60_v19 }
  0x38   :  { %v77_v27 = vsel %vm76_vm0, %v74_v17, %v71_v24 }
  0x39   :  { %v86_v29 = vsel %vm85_vm1, %v83_v21, %v80_v25  ;;  %v87_v30 = vmax.f32 %v77_v27, -100.0 }
  0x3a   :  { %v88_v32 = vmax.f32 %v86_v29, -100.0 }
  0x3b   :  { %v93_v34 = vmul.f32 %v91_v26, %v87_v30 }
  0x3c   :  { %v94_v35 = vmul.f32 %v92_v28, %v88_v32 }
  0x3d   :  { %v95_v36 = vadd.f32 %v93_v34, %v89_v31 }
  0x3e   :  { %v96_v37 = vadd.f32 %v94_v35, %v90_v33 }
  0x3f   :  { %v97_v38 = vsub.f32 0.0, %v95_v36 }
  0x40   :  { %v98_v39 = vsub.f32 0.0, %v96_v37 }
  0x42   :  { %v100_v40 = vadd.f32 %v98_v39, %v97_v38 }
  0x44   :  { %107 = vst [vmem:[#allocation8] sm:$0xff] %v100_v40 }
  0x45   :  { %192 = shalt.err (!%p189_p6)
}
  0x46   :  { %s193_s10 = scalar_lea.hbm %s267_s2, 128 }
  0x47   :  { %p194_p7 = scmp.ne.s32.totalorder %s267_s2, %s193_s10  ;;  %p197_p8 = scmp.lt.u32.totalorder %s193_s10, %s267_s2 }
  0x49   :  { %p199_p9 = pnand %p197_p8, %p194_p7 }
  0x4b   :  { %202 = shalt.err (!%p199_p9)
}
  0x4c   :  { %117 = dma.vmem_to_hbm [thread:$0]  %s115_s6, 128, %s267_s2, [#allocation5]  }
  0x4d   :  { %207 = dma.done.wait [#allocation5], 128  }
  0x4e   :  { %208 = vsyncadd [#allocation5], 4294967168 }
  0x4f   :  { %121 = vsyncpa [#allocation4], 1 }
  0x50   :  { %122 = vsyncpa [#allocation7], 1 }
  0x51   :  { %123 = vsyncpa [#allocation5], 1 }

</bundles_post_ra>
